<compile_context>
chip_gen: v6e
topology: v6e:2x2x1
jax: 0.10.0
libtpu: 0.0.40
codegen_flags: <defaults>
</compile_context>

<pallas_src>
import functools

import jax
import jax.numpy as jnp
from jax import lax
from jax.experimental import pallas as pl
from jax.experimental.pallas import tpu as pltpu

EPS = 1e-5     # nn.BatchNorm2d default
LANE = 128     # TPU lane width; channel dims are padded to a multiple of this


def _round_up(a, b):
    return (a + b - 1) // b * b


def _ds(start, size, stride):
    return pl.ds(start, size) if stride == 1 else pl.ds(start, size, stride)


_CONV_PARAMS = pltpu.CompilerParams(
    dimension_semantics=("parallel",),
    vmem_limit_bytes=32 * 1024 * 1024,
)


# ---------------------------------------------------------------------------
# Kernel 1: per-channel sum / sum-of-squares (training-mode BN1 statistics).
# ---------------------------------------------------------------------------
def _bn_stats_kernel(x_ref, sum_ref, sq_ref):
    @pl.when(pl.program_id(0) == 0)
    def _init():
        sum_ref[...] = jnp.zeros_like(sum_ref)
        sq_ref[...] = jnp.zeros_like(sq_ref)

    x = x_ref[...].astype(jnp.float32)          # stats always accumulate in f32
    sum_ref[...] += jnp.sum(x, axis=0, keepdims=True)
    sq_ref[...] += jnp.sum(x * x, axis=0, keepdims=True)


def bn_batch_stats(x2d, n_valid, tile_m=512):
    """Per-channel (mean, biased var) over the first n_valid rows of x2d."""
    M, C = x2d.shape
    tm = tile_m if M >= tile_m else _round_up(M, 8)
    Mp = _round_up(M, tm)
    if Mp != M:
        x2d = jnp.pad(x2d, ((0, Mp - M), (0, 0)))   # zero rows: no effect on sums
    sums, sqs = pl.pallas_call(
        _bn_stats_kernel,
        out_shape=(jax.ShapeDtypeStruct((1, C), jnp.float32),
                   jax.ShapeDtypeStruct((1, C), jnp.float32)),
        grid=(Mp // tm,),
        in_specs=[pl.BlockSpec((tm, C), lambda i: (i, 0))],
        out_specs=(pl.BlockSpec((1, C), lambda i: (0, 0)),
                   pl.BlockSpec((1, C), lambda i: (0, 0))),
        compiler_params=pltpu.CompilerParams(dimension_semantics=("arbitrary",)),
    )(x2d)
    mean = sums[0] / n_valid
    # NOTE: E[x^2]-mean^2 can cancel for large means; fine at WRN scales (f32).
    var = jnp.maximum(sqs[0] / n_valid - mean * mean, 0.0)
    return mean, var


def _bn_affine(gamma_p, beta_p, mean, var):
    inv = lax.rsqrt(var + EPS)
    scale = gamma_p * inv
    shift = beta_p - mean * scale
    return (scale.reshape(1, -1).astype(jnp.float32),
            shift.reshape(1, -1).astype(jnp.float32))


# ---------------------------------------------------------------------------
# In-kernel helpers (traced inline).
# ---------------------------------------------------------------------------
def _activate(x3d, scale_ref, shift_ref, cdt):
    """relu(x * scale + shift) computed in f32, returned in compute dtype."""
    c = x3d.shape[-1]
    s = scale_ref[...].reshape(1, 1, c)
    b = shift_ref[...].reshape(1, 1, c)
    return jnp.maximum(x3d.astype(jnp.float32) * s + b, 0.0).astype(cdt)


def _zero_packed_border(act_ref, h, wo, c, stride, cdt):
    """Zero only the packed-scratch cells the interior fill never writes.

    These encode Conv2d's zero padding.  Cheap strip writes done every grid
    step, so correctness never depends on scratch state (megacore-safe).
    """
    zrow = jnp.zeros((1, wo, 3 * c), cdt)
    act_ref[pl.ds(0, 1), :, :] = zrow                 # padded top row
    act_ref[pl.ds(h + 1, 1), :, :] = zrow             # padded bottom row
    zcol = jnp.zeros((h, 1, c), cdt)
    act_ref[pl.ds(1, h), pl.ds(0, 1), pl.ds(0, c)] = zcol            # kx=0, j=0
    if stride == 1 and wo > 1:
        act_ref[pl.ds(1, h), pl.ds(wo - 1, 1), pl.ds(2 * c, c)] = zcol  # kx=2, last j


def _fill_packed_interior(act_ref, a, stage_ref, h, w, wo, c, stride):
    """act_ref[r, j, kx*c:(kx+1)*c] = a_pad[r, stride*j + kx, :]  (interior cells).

    All writes are unit-stride.  Stride-2 column subsampling is done with two
    strided reads from a small staging scratch (doc-endorsed ref ds stride),
    never with value-level strided slicing or int+slice ref mixes.
    """
    if stride == 1:
        if wo > 1:
            act_ref[pl.ds(1, h), pl.ds(1, wo - 1), pl.ds(0, c)] = a[:, :wo - 1, :]
        act_ref[pl.ds(1, h), pl.ds(0, wo), pl.ds(c, c)] = a
        if wo > 1:
            act_ref[pl.ds(1, h), pl.ds(0, wo - 1), pl.ds(2 * c, c)] = a[:, 1:, :]
    else:  # stride == 2, w even
        stage_ref[...] = a
        a_even = stage_ref[:, pl.ds(0, wo, 2), :]      # cols 0,2,...,w-2
        a_odd = stage_ref[:, pl.ds(1, wo, 2), :]       # cols 1,3,...,w-1
        if wo > 1:
            act_ref[pl.ds(1, h), pl.ds(1, wo - 1), pl.ds(0, c)] = a_odd[:, :wo - 1, :]
        act_ref[pl.ds(1, h), pl.ds(0, wo), pl.ds(c, c)] = a_even
        act_ref[pl.ds(1, h), pl.ds(0, wo), pl.ds(2 * c, c)] = a_odd


def _conv3x3_packed(act_ref, w_ref, ho, wo, stride):
    """3x3 conv = 3 MXU matmuls with K = 3*Cin (kx packed along K), f32 acc."""
    K = w_ref.shape[1]
    cout = w_ref.shape[2]
    acc = jnp.zeros((ho * wo, cout), jnp.float32)
    for ky in range(3):
        rows = act_ref[_ds(ky, ho, stride), :, :]              # (ho, wo, 3*Cin)
        acc = acc + jnp.dot(rows.reshape(ho * wo, K), w_ref[ky],
                            preferred_element_type=jnp.float32)
    return acc


# ---------------------------------------------------------------------------
# Kernel 2: conv1 = relu(bn1(x)) prologue + 3x3/stride conv
#           + fused BN2 partial statistics epilogue
#           + (projection case) strided activated-shortcut output.
# ---------------------------------------------------------------------------
def _conv1_kernel(x_ref, s1_ref, b1_ref, w1_ref, y_ref, ysum_ref, ysq_ref, *rest,
                  h, w, ho, wo, cin, stride, cdt, emit_shortcut):
    if emit_shortcut:
        xa_ref, rest = rest[0], rest[1:]
    act_ref = rest[0]
    stage_ref = rest[1] if stride == 2 else None
    cout = w1_ref.shape[-1]

    a = _activate(x_ref[0], s1_ref, b1_ref, cdt)               # relu(bn1(x))
    _zero_packed_border(act_ref, h, wo, cin, stride, cdt)
    _fill_packed_interior(act_ref, a, stage_ref, h, w, wo, cin, stride)

    acc = _conv3x3_packed(act_ref, w1_ref, ho, wo, stride)     # (ho*wo, cout) f32

    y_ref[0] = acc.reshape(ho, wo, cout).astype(y_ref.dtype)
    # Fused BN2 statistics: per-sample partial sums, finished in JAX.
    ysum_ref[...] = jnp.sum(acc, axis=0, keepdims=True).reshape(1, 1, cout)
    ysq_ref[...] = jnp.sum(acc * acc, axis=0, keepdims=True).reshape(1, 1, cout)

    if emit_shortcut:
        if stride == 1:
            xa_ref[0] = a
        else:
            # 1x1 stride-2 shortcut samples rows/cols 0,2,... of relu(bn1(x)).
            xa_ref[0] = stage_ref[pl.ds(0, ho, 2), pl.ds(0, wo, 2), :]


def conv1_fused(x, scale1, shift1, w1k, *, stride, ho, wo, cdt, emit_shortcut):
    N, H, W, Cin = x.shape
    Cout = w1k.shape[-1]
    out_shapes = [jax.ShapeDtypeStruct((N, ho, wo, Cout), cdt),
                  jax.ShapeDtypeStruct((N, 1, Cout), jnp.float32),
                  jax.ShapeDtypeStruct((N, 1, Cout), jnp.float32)]
    out_specs = [pl.BlockSpec((1, ho, wo, Cout), lambda n: (n, 0, 0, 0)),
                 pl.BlockSpec((1, 1, Cout), lambda n: (n, 0, 0)),
                 pl.BlockSpec((1, 1, Cout), lambda n: (n, 0, 0))]
    if emit_shortcut:
        out_shapes.append(jax.ShapeDtypeStruct((N, ho, wo, Cin), cdt))
        out_specs.append(pl.BlockSpec((1, ho, wo, Cin), lambda n: (n, 0, 0, 0)))
    scratch = [pltpu.VMEM((H + 2, wo, 3 * Cin), cdt)]
    if stride == 2:
        scratch.append(pltpu.VMEM((H, W, Cin), cdt))

    kernel = functools.partial(_conv1_kernel, h=H, w=W, ho=ho, wo=wo, cin=Cin,
                               stride=stride, cdt=cdt, emit_shortcut=emit_shortcut)
    return pl.pallas_call(
        kernel,
        out_shape=tuple(out_shapes),
        grid=(N,),
        in_specs=[pl.BlockSpec((1, H, W, Cin), lambda n: (n, 0, 0, 0)),
                  pl.BlockSpec((1, Cin), lambda n: (0, 0)),
                  pl.BlockSpec((1, Cin), lambda n: (0, 0)),
                  pl.BlockSpec((3, 3 * Cin, Cout), lambda n: (0, 0, 0))],
        out_specs=tuple(out_specs),
        scratch_shapes=scratch,
        compiler_params=_CONV_PARAMS,
    )(x, scale1, shift1, w1k)


# ---------------------------------------------------------------------------
# Kernel 3a: conv2 = relu(bn2(y)) prologue + 3x3 conv + fused 1x1 projection
# shortcut on the pre-activated, pre-strided xa emitted by conv1.
# ---------------------------------------------------------------------------
def _conv2_proj_kernel(y_ref, s2_ref, b2_ref, w2_ref, xa_ref, wsc_ref, o_ref,
                       act_ref, *, ho, wo, cin, cout, cdt):
    a2 = _activate(y_ref[0], s2_ref, b2_ref, cdt)
    _zero_packed_border(act_ref, ho, wo, cout, 1, cdt)
    _fill_packed_interior(act_ref, a2, None, ho, wo, wo, cout, 1)
    acc = _conv3x3_packed(act_ref, w2_ref, ho, wo, 1)

    xa = xa_ref[0].reshape(ho * wo, cin)
    acc = acc + jnp.dot(xa, wsc_ref[...], preferred_element_type=jnp.float32)
    o_ref[0] = acc.reshape(ho, wo, cout).astype(o_ref.dtype)


def conv2_proj(y, scale2, shift2, w2k, xa, wsc, *, cdt):
    N, ho, wo, cmid = y.shape
    cin = xa.shape[-1]
    cout = w2k.shape[-1]
    kernel = functools.partial(_conv2_proj_kernel, ho=ho, wo=wo, cin=cin,
                               cout=cout, cdt=cdt)
    return pl.pallas_call(
        kernel,
        out_shape=jax.ShapeDtypeStruct((N, ho, wo, cout), jnp.float32),
        grid=(N,),
        in_specs=[pl.BlockSpec((1, ho, wo, cmid), lambda n: (n, 0, 0, 0)),
                  pl.BlockSpec((1, cmid), lambda n: (0, 0)),
                  pl.BlockSpec((1, cmid), lambda n: (0, 0)),
                  pl.BlockSpec((3, 3 * cmid, cout), lambda n: (0, 0, 0)),
                  pl.BlockSpec((1, ho, wo, cin), lambda n: (n, 0, 0, 0)),
                  pl.BlockSpec((cin, cout), lambda n: (0, 0))],
        out_specs=pl.BlockSpec((1, ho, wo, cout), lambda n: (n, 0, 0, 0)),
        scratch_shapes=[pltpu.VMEM((ho + 2, wo, 3 * cmid), cdt)],
        compiler_params=_CONV_PARAMS,
    )(y, scale2, shift2, w2k, xa, wsc)


# ---------------------------------------------------------------------------
# Kernel 3b: conv2 + identity residual (in_channels == out_channels, stride 1).
# ---------------------------------------------------------------------------
def _conv2_ident_kernel(y_ref, s2_ref, b2_ref, w2_ref, x_ref, o_ref, act_ref, *,
                        ho, wo, cout, cdt):
    a2 = _activate(y_ref[0], s2_ref, b2_ref, cdt)
    _zero_packed_border(act_ref, ho, wo, cout, 1, cdt)
    _fill_packed_interior(act_ref, a2, None, ho, wo, wo, cout, 1)
    acc = _conv3x3_packed(act_ref, w2_ref, ho, wo, 1)
    acc = acc + x_ref[0].reshape(ho * wo, cout).astype(jnp.float32)
    o_ref[0] = acc.reshape(ho, wo, cout).astype(o_ref.dtype)


def conv2_ident(y, scale2, shift2, w2k, x, *, cdt):
    N, ho, wo, cmid = y.shape
    cout = w2k.shape[-1]
    kernel = functools.partial(_conv2_ident_kernel, ho=ho, wo=wo, cout=cout, cdt=cdt)
    return pl.pallas_call(
        kernel,
        out_shape=jax.ShapeDtypeStruct((N, ho, wo, cout), jnp.float32),
        grid=(N,),
        in_specs=[pl.BlockSpec((1, ho, wo, cmid), lambda n: (n, 0, 0, 0)),
                  pl.BlockSpec((1, cmid), lambda n: (0, 0)),
                  pl.BlockSpec((1, cmid), lambda n: (0, 0)),
                  pl.BlockSpec((3, 3 * cmid, cout), lambda n: (0, 0, 0)),
                  pl.BlockSpec((1, ho, wo, cout), lambda n: (n, 0, 0, 0))],
        out_specs=pl.BlockSpec((1, ho, wo, cout), lambda n: (n, 0, 0, 0)),
        scratch_shapes=[pltpu.VMEM((ho + 2, wo, 3 * cmid), cdt)],
        compiler_params=_CONV_PARAMS,
    )(y, scale2, shift2, w2k, x)


# ---------------------------------------------------------------------------
# Parameter / layout glue
# ---------------------------------------------------------------------------
def _channel_pad(a, cp, value=0.0):
    c = a.shape[-1]
    if c == cp:
        return a
    pads = [(0, 0)] * (a.ndim - 1) + [(0, cp - c)]
    return jnp.pad(a, pads, constant_values=value)


def _prep_w3x3_packed(w, cin_p, cout_p, cdt):
    """OIHW -> (ky, kx*cin_p + cin, cout_p), matching the kx-packed scratch."""
    out_c, in_c = w.shape[0], w.shape[1]
    wt = jnp.transpose(w, (2, 3, 1, 0))                        # (ky, kx, in, out)
    wt = jnp.pad(wt, ((0, 0), (0, 0), (0, cin_p - in_c), (0, cout_p - out_c)))
    return wt.reshape(3, 3 * cin_p, cout_p).astype(cdt)


def _prep_w1x1(w, cin_p, cout_p, cdt):
    out_c, in_c = w.shape[0], w.shape[1]
    wt = jnp.transpose(w[:, :, 0, 0], (1, 0))
    wt = jnp.pad(wt, ((0, cin_p - in_c), (0, cout_p - out_c)))
    return wt.astype(cdt)


def basic_block_forward(x_nchw, params, stride, drop_rate=0.0,
                        compute_dtype=jnp.float32):
    """Forward of the pre-activation BasicBlock (training-mode BatchNorm)."""
    # TODO(synk): training-mode dropout (drop_rate > 0) not implemented.
    assert drop_rate == 0.0

    N, in_c, H, W = x_nchw.shape
    out_c = params['w1'].shape[0]
    preact_both = in_c != out_c
    if not preact_both:
        assert stride == 1, "identity shortcut requires stride == 1"
    if stride != 1:
        assert stride == 2 and H % 2 == 0 and W % 2 == 0

    ho = (H - 1) // stride + 1
    wo = (W - 1) // stride + 1
    cin_p = _round_up(in_c, LANE)
    cout_p = _round_up(out_c, LANE)
    cdt = compute_dtype

    # NCHW -> NHWC, channels padded to 128 lanes, kept in compute dtype.
    x = jnp.transpose(x_nchw, (0, 2, 3, 1))
    x = _channel_pad(x, cin_p).astype(cdt)

    g1 = _channel_pad(params['gamma1'], cin_p, 1.0)
    b1 = _channel_pad(params['beta1'], cin_p, 0.0)
    g2 = _channel_pad(params['gamma2'], cout_p, 1.0)
    b2 = _channel_pad(params['beta2'], cout_p, 0.0)

    # BN1 batch statistics -> per-channel (scale, shift), f32.
    mean1, var1 = bn_batch_stats(x.reshape(-1, cin_p), N * H * W)
    scale1, shift1 = _bn_affine(g1, b1, mean1, var1)

    # conv1 with fused relu(bn1(.)) prologue, BN2 partial stats epilogue and
    # (projection case) the strided activated shortcut as a second output.
    w1k = _prep_w3x3_packed(params['w1'], cin_p, cout_p, cdt)
    outs = conv1_fused(x, scale1, shift1, w1k, stride=stride, ho=ho, wo=wo,
                       cdt=cdt, emit_shortcut=preact_both)
    if preact_both:
        y, ysum, ysq, xa = outs
    else:
        y, ysum, ysq = outs

    # Finish BN2 statistics from per-sample partials (tiny reduction in JAX).
    n2 = N * ho * wo
    mean2 = jnp.sum(ysum, axis=0)[0] / n2
    var2 = jnp.maximum(jnp.sum(ysq, axis=0)[0] / n2 - mean2 * mean2, 0.0)
    scale2, shift2 = _bn_affine(g2, b2, mean2, var2)

    # conv2 with fused relu(bn2(.)) prologue and fused residual.
    w2k = _prep_w3x3_packed(params['w2'], cout_p, cout_p, cdt)
    if preact_both:
        wsc = _prep_w1x1(params['w_sc'], cin_p, cout_p, cdt)
        out = conv2_proj(y, scale2, shift2, w2k, xa, wsc, cdt=cdt)
    else:
        out = conv2_ident(y, scale2, shift2, w2k, x, cdt=cdt)

    out = out[..., :out_c]                                 # strip channel padding
    return jnp.transpose(out, (0, 3, 1, 2))                # NHWC -> NCHW


# ---------------------------------------------------------------------------
# Pure-JAX reference (mirrors the PyTorch forward in NCHW) for validation
# ---------------------------------------------------------------------------
def _ref_forward(x, params, stride, preactivate_both):
    def bn_relu_ref(t, gamma, beta):
        mean = jnp.mean(t, axis=(0, 2, 3), keepdims=True)
        var = jnp.mean(jnp.square(t - mean), axis=(0, 2, 3), keepdims=True)
        y = (t - mean) / jnp.sqrt(var + EPS)
        y = y * gamma.reshape(1, -1, 1, 1) + beta.reshape(1, -1, 1, 1)
        return jnp.maximum(y, 0.0)

    def conv(t, w, s, pad):
        return lax.conv_general_dilated(
            t, w, (s, s), [(pad, pad), (pad, pad)],
            dimension_numbers=('NCHW', 'OIHW', 'NCHW'))

    if preactivate_both:
        xa = bn_relu_ref(x, params['gamma1'], params['beta1'])
        y = conv(xa, params['w1'], stride, 1)
        sc = conv(xa, params['w_sc'], stride, 0)
    else:
        ya = bn_relu_ref(x, params['gamma1'], params['beta1'])
        y = conv(ya, params['w1'], stride, 1)
        sc = x
    ya2 = bn_relu_ref(y, params['gamma2'], params['beta2'])
    return conv(ya2, params['w2'], 1, 1) + sc


def _make_params(key, in_c, out_c, with_proj):
    k = jax.random.split(key, 7)
    p = {
        'w1': 0.1 * jax.random.normal(k[0], (out_c, in_c, 3, 3), jnp.float32),
        'w2': 0.1 * jax.random.normal(k[1], (out_c, out_c, 3, 3), jnp.float32),
        'gamma1': 1.0 + 0.1 * jax.random.normal(k[2], (in_c,), jnp.float32),
        'beta1': 0.1 * jax.random.normal(k[3], (in_c,), jnp.float32),
        'gamma2': 1.0 + 0.1 * jax.random.normal(k[4], (out_c,), jnp.float32),
        'beta2': 0.1 * jax.random.normal(k[5], (out_c,), jnp.float32),
    }
    if with_proj:
        p['w_sc'] = 0.1 * jax.random.normal(k[6], (out_c, in_c, 1, 1),
                                            jnp.float32)
    return p


if __name__ == "__main__":
    key = jax.random.PRNGKey(0)
    kp1, kx1, kp2, kx2 = jax.random.split(key, 4)

    # --- config A: projection shortcut (in_c != out_c), stride 2 ------------
    in_c, out_c, stride = 4, 8, 2
    N, H, W = 2, 16, 16
    params_a = _make_params(kp1, in_c, out_c, with_proj=True)
    x_a = jax.random.normal(kx1, (N, in_c, H, W), jnp.float32)

    out_a = jax.block_until_ready(
        basic_block_forward(x_a, params_a, stride, 0.0,
                            compute_dtype=jnp.float32))
    ref_a = _ref_forward(x_a, params_a, stride, preactivate_both=True)
    assert out_a.shape == ref_a.shape == (N, out_c, H // stride, W // stride)
    err_a = float(jnp.max(jnp.abs(out_a - ref_a)))
    assert err_a < 1e-3, err_a

    # Same block with bf16 MXU operands / bf16 intermediates (fast path).
    out_a16 = jax.block_until_ready(
        basic_block_forward(x_a, params_a, stride, 0.0,
                            compute_dtype=jnp.bfloat16))
    err_a16 = float(jnp.max(jnp.abs(out_a16.astype(jnp.float32) - ref_a)))
    assert err_a16 < 1.5e-1, err_a16

    # --- config B: identity shortcut (in_c == out_c), stride 1 --------------
    in_c_b, out_c_b, stride_b = 8, 8, 1
    params_b = _make_params(kp2, in_c_b, out_c_b, with_proj=False)
    x_b = jax.random.normal(kx2, (N, in_c_b, H, W), jnp.float32)

    out_b = jax.block_until_ready(
        basic_block_forward(x_b, params_b, stride_b, 0.0,
                            compute_dtype=jnp.float32))
    ref_b = _ref_forward(x_b, params_b, stride_b, preactivate_both=False)
    assert out_b.shape == ref_b.shape == (N, out_c_b, H, W)
    err_b = float(jnp.max(jnp.abs(out_b - ref_b)))
    assert err_b < 1e-3, err_b

    print("KERNEL_OK")
</pallas_src>

<mosaic_0001>
module attributes {stable_mosaic.version = 11 : i64} {
  func.func @_bn_stats_kernel(%arg0: i32, %arg1: memref<512x128xf32, #tpu.memory_space<vmem>>, %arg2: memref<1x128xf32, #tpu.memory_space<vmem>>, %arg3: memref<1x128xf32, #tpu.memory_space<vmem>>) attributes {dimension_semantics = [#tpu.dimension_semantics<arbitrary>], iteration_bounds = array<i64: 1>, scalar_prefetch = 0 : i64, scratch_operands = 0 : i64, tpu.core_type = #tpu.core_type<tc>, window_params = [{transform_indices = @transform_0, window_bounds = array<i64: 512, 128>}, {pipeline_mode = #tpu.pipeline_mode<synchronous>, transform_indices = @transform_1, window_bounds = array<i64: 1, 128>}, {pipeline_mode = #tpu.pipeline_mode<synchronous>, transform_indices = @transform_2, window_bounds = array<i64: 1, 128>}]} {
    %c0_i32 = arith.constant 0 : i32
    %0 = arith.cmpi eq, %arg0, %c0_i32 : i32
    %1 = arith.extui %0 : i1 to i32
    %c0_i32_0 = arith.constant 0 : i32
    %2 = arith.cmpi ne, %1, %c0_i32_0 : i32
    scf.if %2 {
      %cst_11 = arith.constant 0.000000e+00 : f32
      %15 = vector.broadcast %cst_11 : f32 to vector<1x128xf32>
      %c0_12 = arith.constant 0 : index
      %c0_13 = arith.constant 0 : index
      %16 = vector.load %arg2[%c0_12, %c0_13] : memref<1x128xf32, #tpu.memory_space<vmem>>, vector<1x128xf32>
      tpu.vector_store %arg2[%c0_12, %c0_13], %15 {strides = array<i32>} : memref<1x128xf32, #tpu.memory_space<vmem>>, vector<1x128xf32>,
      %cst_14 = arith.constant 0.000000e+00 : f32
      %17 = vector.broadcast %cst_14 : f32 to vector<1x128xf32>
      %c0_15 = arith.constant 0 : index
      %c0_16 = arith.constant 0 : index
      %18 = vector.load %arg3[%c0_15, %c0_16] : memref<1x128xf32, #tpu.memory_space<vmem>>, vector<1x128xf32>
      tpu.vector_store %arg3[%c0_15, %c0_16], %17 {strides = array<i32>} : memref<1x128xf32, #tpu.memory_space<vmem>>, vector<1x128xf32>,
    } else {
    }
    %c0 = arith.constant 0 : index
    %c0_1 = arith.constant 0 : index
    %3 = vector.load %arg1[%c0, %c0_1] : memref<512x128xf32, #tpu.memory_space<vmem>>, vector<512x128xf32>
    %c0_2 = arith.constant 0 : index
    %c0_3 = arith.constant 0 : index
    %4 = vector.load %arg2[%c0_2, %c0_3] : memref<1x128xf32, #tpu.memory_space<vmem>>, vector<1x128xf32>
    %cst = arith.constant dense<0.000000e+00> : vector<128xf32>
    %5 = vector.multi_reduction <add>, %3, %cst [0] : vector<512x128xf32> to vector<128xf32>
    %6 = vector.shape_cast %5 : vector<128xf32> to vector<1x128xf32>
    %7 = arith.addf %4, %6 : vector<1x128xf32>
    %c0_4 = arith.constant 0 : index
    %c0_5 = arith.constant 0 : index
    %8 = vector.load %arg2[%c0_4, %c0_5] : memref<1x128xf32, #tpu.memory_space<vmem>>, vector<1x128xf32>
    tpu.vector_store %arg2[%c0_4, %c0_5], %7 {strides = array<i32>} : memref<1x128xf32, #tpu.memory_space<vmem>>, vector<1x128xf32>,
    %c0_6 = arith.constant 0 : index
    %c0_7 = arith.constant 0 : index
    %9 = vector.load %arg3[%c0_6, %c0_7] : memref<1x128xf32, #tpu.memory_space<vmem>>, vector<1x128xf32>
    %10 = arith.mulf %3, %3 : vector<512x128xf32>
    %cst_8 = arith.constant dense<0.000000e+00> : vector<128xf32>
    %11 = vector.multi_reduction <add>, %10, %cst_8 [0] : vector<512x128xf32> to vector<128xf32>
    %12 = vector.shape_cast %11 : vector<128xf32> to vector<1x128xf32>
    %13 = arith.addf %9, %12 : vector<1x128xf32>
    %c0_9 = arith.constant 0 : index
    %c0_10 = arith.constant 0 : index
    %14 = vector.load %arg3[%c0_9, %c0_10] : memref<1x128xf32, #tpu.memory_space<vmem>>, vector<1x128xf32>
    tpu.vector_store %arg3[%c0_9, %c0_10], %13 {strides = array<i32>} : memref<1x128xf32, #tpu.memory_space<vmem>>, vector<1x128xf32>,
    return
  }
  func.func @transform_0(%arg0: i32) -> (i32, i32) {
    %c0_i32 = arith.constant 0 : i32
    %c0_i32_0 = arith.constant 0 : i32
    return %arg0, %c0_i32 : i32, i32
  }
  func.func @transform_1(%arg0: i32) -> (i32, i32) {
    %c0_i32 = arith.constant 0 : i32
    %c0_i32_0 = arith.constant 0 : i32
    %c0_i32_1 = arith.constant 0 : i32
    return %c0_i32, %c0_i32_0 : i32, i32
  }
  func.func @transform_2(%arg0: i32) -> (i32, i32) {
    %c0_i32 = arith.constant 0 : i32
    %c0_i32_0 = arith.constant 0 : i32
    %c0_i32_1 = arith.constant 0 : i32
    return %c0_i32, %c0_i32_0 : i32, i32
  }
}

</mosaic_0001>

<bundles_post_ra>
// kernel: tpu_custom_call.1
= control target key start
LH: loop header
LB: loop body
LE: loop exit
PB: predicated region body
PF: predicated region fallthrough
CT: control target
= control target key end

     0   :  { %8 = vsyncpa [#allocation3], 0  ;;  %s435_s0 = inlined_call_operand.hbm [shape: f32[512,128], index: 0, kind: input, shape index: {}]   ;;  %s436_s1 = inlined_call_operand.hbm [shape: f32[1,128], index: 1, kind: output, shape index: {0}]   ;;  %s437_s2 = inlined_call_operand.hbm [shape: f32[1,128], index: 2, kind: output, shape index: {1}]  }
   0x1   :  { %9 = vsyncpa [#allocation4], 0 }
   0x2   :  { %10 = vsyncpa [#allocation7], 0  ;;  %s405_s9 = smov [#allocation2]  }
   0x3   :  { %s16_s10 = sshll.u32 %s405_s9, 4  ;;  %s17_s10 = int_to_ptr.vmem [resolvable:$true] %s16_s10 }
   0x4   :  { %s347_s11 = scalar_lea.vmem %s17_s10, 8192  ;;  %p352_p1 = scmp.lt.s32.totalorder %s17_s10, %s17_s10 }
   0x5   :  { %p348_p0 = scmp.ne.s32.totalorder %s17_s10, %s347_s11  ;;  %p353_p2 = scmp.lt.s32.totalorder %s347_s11, %s347_s11 }
   0x7   :  { %p354_p3 = por %p353_p2, %p352_p1 }
   0x9   :  { %p355_p4 = pnand %p354_p3, %p348_p0 }
   0xb   :  { %358 = shalt.err (!%p355_p4)
}
   0xc   :  { %s406_s12 = smov 128   ;;  %s407_s13 = smov 8  }
   0xd   :  { %22 = dma.hbm_to_vmem [thread:$0]  %s435_s0, 8192, %s17_s10, [#allocation3], %s406_s12, %s406_s12, %s407_s13  }
   0xe   :  { %399 = dma.done.wait [#allocation3], 8192  }
   0xf   :  { %400 = vsyncadd [#allocation3], 4294959104  ;;  %v408_v0 = vmov 0.0   ;;  %v32_v1 = vld [vmem:[#allocation2] sm:$0xff]  ;;  %v33_v2 = vld [vmem:[#allocation2 + $0x8] sm:$0xff]  ;;  %s409_s0 = smov [#allocation5]  }
  0x10   :  { %30 = vst [vmem:[#allocation5] sm:$0x1] %v408_v0  ;;  %31 = vst [vmem:[#allocation6] sm:$0x1] %v408_v0  ;;  %v34_v3 = vld [vmem:[#allocation2 + $0x10] sm:$0xff]  ;;  %v35_v4 = vld [vmem:[#allocation2 + $0x18] sm:$0xff]  ;;  %v97_v5 = vadd.f32 %v33_v2, %v32_v1  ;;  %v169_v6 = vmul.f32 %v32_v1, %v32_v1  ;;  %v170_v7 = vmul.f32 %v33_v2, %v33_v2 }
  0x11   :  { %v171_v8 = vmul.f32 %v34_v3, %v34_v3  ;;  %v36_v9 = vld [vmem:[#allocation2 + $0x20] sm:$0xff]  ;;  %v172_v11 = vmul.f32 %v35_v4, %v35_v4  ;;  %v37_v13 = vld [vmem:[#allocation2 + $0x28] sm:$0xff]  ;;  %v38_v17 = vld [vmem:[#allocation2 + $0x30] sm:$0xff]  ;;  %s310_s16 = sshll.u32 %s409_s0, 4  ;;  %s410_s17 = smov [#allocation6]   ;;  %s311_s16 = int_to_ptr.vmem [resolvable:$true] %s310_s16 }
  0x12   :  { %v98_v10 = vadd.f32 %v97_v5, %v34_v3  ;;  %v233_v12 = vadd.f32 %v170_v7, %v169_v6  ;;  %v173_v15 = vmul.f32 %v36_v9, %v36_v9  ;;  %v174_v19 = vmul.f32 %v37_v13, %v37_v13  ;;  %v39_v21 = vld [vmem:[#allocation2 + $0x38] sm:$0xff]  ;;  %v40_v25 = vld [vmem:[#allocation2 + $0x40] sm:$0xff]  ;;  %v41_v29 = vld [vmem:[#allocation2 + $0x48] sm:$0xff]  ;;  %s320_s18 = sshll.u32 %s410_s17, 4  ;;  %s359_s19 = scalar_lea.vmem %s311_s16, 16  ;;  %s321_s18 = int_to_ptr.vmem [resolvable:$true] %s320_s18 }
  0x13   :  { %v175_v23 = vmul.f32 %v38_v17, %v38_v17  ;;  %v176_v27 = vmul.f32 %v39_v21, %v39_v21  ;;  %v177_v31 = vmul.f32 %v40_v25, %v40_v25  ;;  %v42_v33 = vld [vmem:[#allocation2 + $0x50] sm:$0xff]  ;;  %v178_v35 = vmul.f32 %v41_v29, %v41_v29  ;;  %v43_v37 = vld [vmem:[#allocation2 + $0x58] sm:$0xff]  ;;  %v44_v41 = vld [vmem:[#allocation2 + $0x60] sm:$0xff]  ;;  %p360_p5 = scmp.ne.s32.totalorder %s311_s16, %s359_s19  ;;  %s363_s20 = scalar_lea.vmem %s311_s16, 32 }
  0x14   :  { %v99_v14 = vadd.f32 %v98_v10, %v35_v4  ;;  %v234_v16 = vadd.f32 %v233_v12, %v171_v8  ;;  %v179_v39 = vmul.f32 %v42_v33, %v42_v33  ;;  %v180_v43 = vmul.f32 %v43_v37, %v43_v37  ;;  %v45_v45 = vld [vmem:[#allocation2 + $0x68] sm:$0xff]  ;;  %v46_v49 = vld [vmem:[#allocation2 + $0x70] sm:$0xff]  ;;  %v47_v53 = vld [vmem:[#allocation2 + $0x78] sm:$0xff]  ;;  %p364_p6 = scmp.lt.s32.totalorder %s311_s16, %s311_s16  ;;  %p365_p7 = scmp.lt.s32.totalorder %s363_s20, %s359_s19 }
  0x15   :  { %v181_v47 = vmul.f32 %v44_v41, %v44_v41  ;;  %v182_v51 = vmul.f32 %v45_v45, %v45_v45  ;;  %v183_v55 = vmul.f32 %v46_v49, %v46_v49  ;;  %v48_v57 = vld [vmem:[#allocation2 + $0x80] sm:$0xff]  ;;  %v184_v59 = vmul.f32 %v47_v53, %v47_v53  ;;  %v49_v61 = vld [vmem:[#allocation2 + $0x88] sm:$0xff]  ;;  %v50_v1 = vld [vmem:[#allocation2 + $0x90] sm:$0xff] }
  0x16   :  { %v100_v18 = vadd.f32 %v99_v14, %v36_v9  ;;  %v235_v20 = vadd.f32 %v234_v16, %v172_v11  ;;  %v185_v63 = vmul.f32 %v48_v57, %v48_v57  ;;  %v186_v3 = vmul.f32 %v49_v61, %v49_v61  ;;  %v51_v5 = vld [vmem:[#allocation2 + $0x98] sm:$0xff]  ;;  %v52_v9 = vld [vmem:[#allocation2 + $0xa0] sm:$0xff]  ;;  %p366_p8 = por %p365_p7, %p364_p6 }
  0x17   :  { %v187_v7 = vmul.f32 %v50_v1, %v50_v1  ;;  %v188_v11 = vmul.f32 %v51_v5, %v51_v5 }
  0x18   :  { %v101_v22 = vadd.f32 %v100_v18, %v37_v13  ;;  %v236_v24 = vadd.f32 %v235_v20, %v173_v15  ;;  %v53_v13 = vld [vmem:[#allocation2 + $0xa8] sm:$0xff]  ;;  %v189_v15 = vmul.f32 %v52_v9, %v52_v9  ;;  %p367_p9 = pnand %p366_p8, %p360_p5 }
  0x1a   :  { %v102_v26 = vadd.f32 %v101_v22, %v38_v17  ;;  %v237_v28 = vadd.f32 %v236_v24, %v174_v19  ;;  %v54_v17 = vld [vmem:[#allocation2 + $0xb0] sm:$0xff]  ;;  %v190_v19 = vmul.f32 %v53_v13, %v53_v13 }
  0x1c   :  { %v103_v30 = vadd.f32 %v102_v26, %v39_v21  ;;  %v238_v32 = vadd.f32 %v237_v28, %v175_v23  ;;  %v55_v21 = vld [vmem:[#allocation2 + $0xb8] sm:$0xff]  ;;  %v191_v23 = vmul.f32 %v54_v17, %v54_v17 }
  0x1e   :  { %v104_v34 = vadd.f32 %v103_v30, %v40_v25  ;;  %v239_v36 = vadd.f32 %v238_v32, %v176_v27  ;;  %v56_v25 = vld [vmem:[#allocation2 + $0xc0] sm:$0xff]  ;;  %v192_v27 = vmul.f32 %v55_v21, %v55_v21 }
  0x20   :  { %v105_v38 = vadd.f32 %v104_v34, %v41_v29  ;;  %v240_v40 = vadd.f32 %v239_v36, %v177_v31  ;;  %v57_v29 = vld [vmem:[#allocation2 + $0xc8] sm:$0xff]  ;;  %v193_v31 = vmul.f32 %v56_v25, %v56_v25 }
  0x22   :  { %v106_v42 = vadd.f32 %v105_v38, %v42_v33  ;;  %v241_v44 = vadd.f32 %v240_v40, %v178_v35  ;;  %v58_v33 = vld [vmem:[#allocation2 + $0xd0] sm:$0xff]  ;;  %v194_v35 = vmul.f32 %v57_v29, %v57_v29 }
  0x24   :  { %v107_v46 = vadd.f32 %v106_v42, %v43_v37  ;;  %v242_v48 = vadd.f32 %v241_v44, %v179_v39  ;;  %v59_v37 = vld [vmem:[#allocation2 + $0xd8] sm:$0xff]  ;;  %v195_v39 = vmul.f32 %v58_v33, %v58_v33 }
  0x26   :  { %v108_v50 = vadd.f32 %v107_v46, %v44_v41  ;;  %v243_v52 = vadd.f32 %v242_v48, %v180_v43  ;;  %v60_v41 = vld [vmem:[#allocation2 + $0xe0] sm:$0xff]  ;;  %v196_v43 = vmul.f32 %v59_v37, %v59_v37 }
  0x28   :  { %v109_v54 = vadd.f32 %v108_v50, %v45_v45  ;;  %v244_v56 = vadd.f32 %v243_v52, %v181_v47  ;;  %v61_v45 = vld [vmem:[#allocation2 + $0xe8] sm:$0xff]  ;;  %v197_v47 = vmul.f32 %v60_v41, %v60_v41 }
  0x2a   :  { %v110_v58 = vadd.f32 %v109_v54, %v46_v49  ;;  %v245_v60 = vadd.f32 %v244_v56, %v182_v51  ;;  %v62_v49 = vld [vmem:[#allocation2 + $0xf0] sm:$0xff]  ;;  %v198_v51 = vmul.f32 %v61_v45, %v61_v45 }
  0x2c   :  { %v111_v62 = vadd.f32 %v110_v58, %v47_v53  ;;  %v246_v0 = vadd.f32 %v245_v60, %v183_v55  ;;  %v63_v53 = vld [vmem:[#allocation2 + $0xf8] sm:$0xff]  ;;  %v199_v55 = vmul.f32 %v62_v49, %v62_v49 }
  0x2e   :  { %v112_v2 = vadd.f32 %v111_v62, %v48_v57  ;;  %v247_v4 = vadd.f32 %v246_v0, %v184_v59  ;;  %v64_v57 = vld [vmem:[#allocation2 + $0x100] sm:$0xff]  ;;  %v200_v59 = vmul.f32 %v63_v53, %v63_v53 }
  0x30   :  { %v113_v6 = vadd.f32 %v112_v2, %v49_v61  ;;  %v248_v8 = vadd.f32 %v247_v4, %v185_v63  ;;  %v65_v61 = vld [vmem:[#allocation2 + $0x108] sm:$0xff]  ;;  %v201_v63 = vmul.f32 %v64_v57, %v64_v57 }
  0x32   :  { %v114_v10 = vadd.f32 %v113_v6, %v50_v1  ;;  %v249_v12 = vadd.f32 %v248_v8, %v186_v3  ;;  %v66_v1 = vld [vmem:[#allocation2 + $0x110] sm:$0xff]  ;;  %v202_v3 = vmul.f32 %v65_v61, %v65_v61 }
  0x34   :  { %v115_v14 = vadd.f32 %v114_v10, %v51_v5  ;;  %v250_v16 = vadd.f32 %v249_v12, %v187_v7  ;;  %v67_v5 = vld [vmem:[#allocation2 + $0x118] sm:$0xff]  ;;  %v203_v7 = vmul.f32 %v66_v1, %v66_v1 }
  0x36   :  { %v116_v18 = vadd.f32 %v115_v14, %v52_v9  ;;  %v251_v20 = vadd.f32 %v250_v16, %v188_v11  ;;  %v68_v9 = vld [vmem:[#allocation2 + $0x120] sm:$0xff]  ;;  %v204_v11 = vmul.f32 %v67_v5, %v67_v5 }
  0x38   :  { %v117_v22 = vadd.f32 %v116_v18, %v53_v13  ;;  %v252_v24 = vadd.f32 %v251_v20, %v189_v15  ;;  %v69_v13 = vld [vmem:[#allocation2 + $0x128] sm:$0xff]  ;;  %v205_v15 = vmul.f32 %v68_v9, %v68_v9 }
  0x3a   :  { %v118_v26 = vadd.f32 %v117_v22, %v54_v17  ;;  %v253_v28 = vadd.f32 %v252_v24, %v190_v19  ;;  %v70_v17 = vld [vmem:[#allocation2 + $0x130] sm:$0xff]  ;;  %v206_v19 = vmul.f32 %v69_v13, %v69_v13 }
  0x3c   :  { %v119_v30 = vadd.f32 %v118_v26, %v55_v21  ;;  %v254_v32 = vadd.f32 %v253_v28, %v191_v23  ;;  %v71_v21 = vld [vmem:[#allocation2 + $0x138] sm:$0xff]  ;;  %v207_v23 = vmul.f32 %v70_v17, %v70_v17 }
  0x3e   :  { %v120_v34 = vadd.f32 %v119_v30, %v56_v25  ;;  %v255_v36 = vadd.f32 %v254_v32, %v192_v27  ;;  %v72_v25 = vld [vmem:[#allocation2 + $0x140] sm:$0xff]  ;;  %v208_v27 = vmul.f32 %v71_v21, %v71_v21 }
  0x40   :  { %v121_v38 = vadd.f32 %v120_v34, %v57_v29  ;;  %v256_v40 = vadd.f32 %v255_v36, %v193_v31  ;;  %v73_v29 = vld [vmem:[#allocation2 + $0x148] sm:$0xff]  ;;  %v209_v31 = vmul.f32 %v72_v25, %v72_v25 }
  0x42   :  { %v122_v42 = vadd.f32 %v121_v38, %v58_v33  ;;  %v257_v44 = vadd.f32 %v256_v40, %v194_v35  ;;  %v74_v33 = vld [vmem:[#allocation2 + $0x150] sm:$0xff]  ;;  %v210_v35 = vmul.f32 %v73_v29, %v73_v29 }
  0x44   :  { %v123_v46 = vadd.f32 %v122_v42, %v59_v37  ;;  %v258_v48 = vadd.f32 %v257_v44, %v195_v39  ;;  %v75_v37 = vld [vmem:[#allocation2 + $0x158] sm:$0xff]  ;;  %v211_v39 = vmul.f32 %v74_v33, %v74_v33 }
  0x46   :  { %v124_v50 = vadd.f32 %v123_v46, %v60_v41  ;;  %v259_v52 = vadd.f32 %v258_v48, %v196_v43  ;;  %v76_v41 = vld [vmem:[#allocation2 + $0x160] sm:$0xff]  ;;  %v212_v43 = vmul.f32 %v75_v37, %v75_v37 }
  0x48   :  { %v125_v54 = vadd.f32 %v124_v50, %v61_v45  ;;  %v260_v56 = vadd.f32 %v259_v52, %v197_v47  ;;  %v77_v45 = vld [vmem:[#allocation2 + $0x168] sm:$0xff]  ;;  %v213_v47 = vmul.f32 %v76_v41, %v76_v41 }
  0x4a   :  { %v126_v58 = vadd.f32 %v125_v54, %v62_v49  ;;  %v261_v60 = vadd.f32 %v260_v56, %v198_v51  ;;  %v78_v49 = vld [vmem:[#allocation2 + $0x170] sm:$0xff]  ;;  %v214_v51 = vmul.f32 %v77_v45, %v77_v45 }
  0x4c   :  { %v127_v62 = vadd.f32 %v126_v58, %v63_v53  ;;  %v262_v0 = vadd.f32 %v261_v60, %v199_v55  ;;  %v79_v53 = vld [vmem:[#allocation2 + $0x178] sm:$0xff]  ;;  %v215_v55 = vmul.f32 %v78_v49, %v78_v49 }
  0x4e   :  { %v128_v2 = vadd.f32 %v127_v62, %v64_v57  ;;  %v263_v4 = vadd.f32 %v262_v0, %v200_v59  ;;  %v80_v57 = vld [vmem:[#allocation2 + $0x180] sm:$0xff]  ;;  %v216_v59 = vmul.f32 %v79_v53, %v79_v53 }
  0x50   :  { %v129_v6 = vadd.f32 %v128_v2, %v65_v61  ;;  %v264_v8 = vadd.f32 %v263_v4, %v201_v63  ;;  %v81_v61 = vld [vmem:[#allocation2 + $0x188] sm:$0xff]  ;;  %v217_v63 = vmul.f32 %v80_v57, %v80_v57 }
  0x52   :  { %v130_v10 = vadd.f32 %v129_v6, %v66_v1  ;;  %v265_v12 = vadd.f32 %v264_v8, %v202_v3  ;;  %v82_v1 = vld [vmem:[#allocation2 + $0x190] sm:$0xff]  ;;  %v218_v3 = vmul.f32 %v81_v61, %v81_v61 }
  0x54   :  { %v131_v14 = vadd.f32 %v130_v10, %v67_v5  ;;  %v266_v16 = vadd.f32 %v265_v12, %v203_v7  ;;  %v83_v5 = vld [vmem:[#allocation2 + $0x198] sm:$0xff]  ;;  %v219_v7 = vmul.f32 %v82_v1, %v82_v1 }
  0x56   :  { %v132_v18 = vadd.f32 %v131_v14, %v68_v9  ;;  %v267_v20 = vadd.f32 %v266_v16, %v204_v11  ;;  %v84_v9 = vld [vmem:[#allocation2 + $0x1a0] sm:$0xff]  ;;  %v220_v11 = vmul.f32 %v83_v5, %v83_v5 }
  0x58   :  { %v133_v22 = vadd.f32 %v132_v18, %v69_v13  ;;  %v268_v24 = vadd.f32 %v267_v20, %v205_v15  ;;  %v85_v13 = vld [vmem:[#allocation2 + $0x1a8] sm:$0xff]  ;;  %v221_v15 = vmul.f32 %v84_v9, %v84_v9 }
  0x5a   :  { %v134_v26 = vadd.f32 %v133_v22, %v70_v17  ;;  %v269_v28 = vadd.f32 %v268_v24, %v206_v19  ;;  %v86_v17 = vld [vmem:[#allocation2 + $0x1b0] sm:$0xff]  ;;  %v222_v19 = vmul.f32 %v85_v13, %v85_v13 }
  0x5c   :  { %v135_v30 = vadd.f32 %v134_v26, %v71_v21  ;;  %v270_v32 = vadd.f32 %v269_v28, %v207_v23  ;;  %v87_v21 = vld [vmem:[#allocation2 + $0x1b8] sm:$0xff]  ;;  %v223_v23 = vmul.f32 %v86_v17, %v86_v17 }
  0x5e   :  { %v136_v34 = vadd.f32 %v135_v30, %v72_v25  ;;  %v271_v36 = vadd.f32 %v270_v32, %v208_v27  ;;  %v88_v25 = vld [vmem:[#allocation2 + $0x1c0] sm:$0xff]  ;;  %v224_v27 = vmul.f32 %v87_v21, %v87_v21 }
  0x60   :  { %v137_v38 = vadd.f32 %v136_v34, %v73_v29  ;;  %v272_v40 = vadd.f32 %v271_v36, %v209_v31  ;;  %v89_v29 = vld [vmem:[#allocation2 + $0x1c8] sm:$0xff]  ;;  %v225_v31 = vmul.f32 %v88_v25, %v88_v25 }
  0x62   :  { %v138_v42 = vadd.f32 %v137_v38, %v74_v33  ;;  %v273_v44 = vadd.f32 %v272_v40, %v210_v35  ;;  %v90_v33 = vld [vmem:[#allocation2 + $0x1d0] sm:$0xff]  ;;  %v226_v35 = vmul.f32 %v89_v29, %v89_v29 }
  0x64   :  { %v139_v46 = vadd.f32 %v138_v42, %v75_v37  ;;  %v274_v48 = vadd.f32 %v273_v44, %v211_v39  ;;  %v91_v37 = vld [vmem:[#allocation2 + $0x1d8] sm:$0xff]  ;;  %v227_v39 = vmul.f32 %v90_v33, %v90_v33 }
  0x66   :  { %v140_v50 = vadd.f32 %v139_v46, %v76_v41  ;;  %v275_v52 = vadd.f32 %v274_v48, %v212_v43  ;;  %v92_v41 = vld [vmem:[#allocation2 + $0x1e0] sm:$0xff]  ;;  %v228_v43 = vmul.f32 %v91_v37, %v91_v37 }
  0x68   :  { %v141_v54 = vadd.f32 %v140_v50, %v77_v45  ;;  %v276_v56 = vadd.f32 %v275_v52, %v213_v47  ;;  %v93_v45 = vld [vmem:[#allocation2 + $0x1e8] sm:$0xff]  ;;  %v229_v47 = vmul.f32 %v92_v41, %v92_v41 }
  0x6a   :  { %v142_v58 = vadd.f32 %v141_v54, %v78_v49  ;;  %v277_v60 = vadd.f32 %v276_v56, %v214_v51  ;;  %v94_v49 = vld [vmem:[#allocation2 + $0x1f0] sm:$0xff]  ;;  %v230_v51 = vmul.f32 %v93_v45, %v93_v45 }
  0x6c   :  { %v143_v62 = vadd.f32 %v142_v58, %v79_v53  ;;  %v278_v0 = vadd.f32 %v277_v60, %v215_v55  ;;  %v95_v53 = vld [vmem:[#allocation2 + $0x1f8] sm:$0xff]  ;;  %v231_v55 = vmul.f32 %v94_v49, %v94_v49 }
  0x6d   :  { %v232_v58 = vmul.f32 %v95_v53, %v95_v53 }
  0x6e   :  { %v144_v2 = vadd.f32 %v143_v62, %v80_v57  ;;  %v279_v4 = vadd.f32 %v278_v0, %v216_v59 }
  0x70   :  { %v145_v6 = vadd.f32 %v144_v2, %v81_v61  ;;  %v280_v8 = vadd.f32 %v279_v4, %v217_v63 }
  0x72   :  { %v146_v10 = vadd.f32 %v145_v6, %v82_v1  ;;  %v281_v12 = vadd.f32 %v280_v8, %v218_v3 }
  0x74   :  { %v147_v14 = vadd.f32 %v146_v10, %v83_v5  ;;  %v282_v16 = vadd.f32 %v281_v12, %v219_v7  ;;  %v96_v7 = vld [vmem:[#allocation5] sm:$0x1]  ;;  %v168_v12 = vld [vmem:[#allocation6] sm:$0x1] }
  0x76   :  { %v148_v18 = vadd.f32 %v147_v14, %v84_v9  ;;  %v283_v20 = vadd.f32 %v282_v16, %v220_v11 }
  0x78   :  { %v149_v22 = vadd.f32 %v148_v18, %v85_v13  ;;  %v284_v24 = vadd.f32 %v283_v20, %v221_v15 }
  0x7a   :  { %v150_v26 = vadd.f32 %v149_v22, %v86_v17  ;;  %v285_v28 = vadd.f32 %v284_v24, %v222_v19 }
  0x7c   :  { %v151_v30 = vadd.f32 %v150_v26, %v87_v21  ;;  %v286_v32 = vadd.f32 %v285_v28, %v223_v23 }
  0x7e   :  { %v152_v34 = vadd.f32 %v151_v30, %v88_v25  ;;  %v287_v36 = vadd.f32 %v286_v32, %v224_v27 }
  0x80   :  { %v153_v38 = vadd.f32 %v152_v34, %v89_v29  ;;  %v288_v40 = vadd.f32 %v287_v36, %v225_v31 }
  0x82   :  { %v154_v42 = vadd.f32 %v153_v38, %v90_v33  ;;  %v289_v44 = vadd.f32 %v288_v40, %v226_v35 }
  0x84   :  { %v155_v46 = vadd.f32 %v154_v42, %v91_v37  ;;  %v290_v48 = vadd.f32 %v289_v44, %v227_v39 }
  0x86   :  { %v156_v50 = vadd.f32 %v155_v46, %v92_v41  ;;  %v291_v52 = vadd.f32 %v290_v48, %v228_v43 }
  0x88   :  { %v157_v54 = vadd.f32 %v156_v50, %v93_v45  ;;  %v292_v56 = vadd.f32 %v291_v52, %v229_v47 }
  0x8a   :  { %v158_v57 = vadd.f32 %v157_v54, %v94_v49  ;;  %v293_v59 = vadd.f32 %v292_v56, %v230_v51 }
  0x8c   :  { %v159_v60 = vadd.f32 %v158_v57, %v95_v53  ;;  %v294_v61 = vadd.f32 %v293_v59, %v231_v55 }
  0x8e   :  { %v160_v62 = vrot.slane %v159_v60, 4  ;;  %v295_v63 = vadd.f32 %v294_v61, %v232_v58 }
  0x90   :  { %v161_v0 = vadd.f32 %v160_v62, %v159_v60  ;;  %v296_v1 = vrot.slane %v295_v63, 4 }
  0x92   :  { %v162_v2 = vrot.slane %v161_v0, 2  ;;  %v297_v3 = vadd.f32 %v296_v1, %v295_v63 }
  0x94   :  { %v163_v4 = vadd.f32 %v162_v2, %v161_v0  ;;  %v298_v5 = vrot.slane %v297_v3, 2 }
  0x96   :  { %v164_v6 = vrot.slane %v163_v4, 1  ;;  %v299_v8 = vadd.f32 %v298_v5, %v297_v3 }
  0x98   :  { %v165_v9 = vadd.f32 %v164_v6, %v163_v4  ;;  %v300_v10 = vrot.slane %v299_v8, 1 }
  0x9a   :  { %v166_v11 = vadd.f32 %v165_v9, %v96_v7  ;;  %v301_v13 = vadd.f32 %v300_v10, %v299_v8 }
  0x9c   :  { %167 = vst [vmem:[#allocation5] sm:$0x1] %v166_v11  ;;  %v302_v14 = vadd.f32 %v301_v13, %v168_v12 }
  0x9d   :  { %370 = shalt.err (!%p367_p9)
}
  0x9e   :  { %313 = dma.vmem_to_hbm [thread:$0]  %s311_s16, 16, %s436_s1, [#allocation4]   ;;  %303 = vst [vmem:[#allocation6] sm:$0x1] %v302_v14 }
  0x9f   :  { %s379_s23 = scalar_lea.vmem %s321_s18, 16  ;;  %s383_s24 = scalar_lea.vmem %s321_s18, 32 }
  0xa0   :  { %p380_p10 = scmp.ne.s32.totalorder %s321_s18, %s379_s23  ;;  %p384_p11 = scmp.lt.s32.totalorder %s321_s18, %s321_s18 }
  0xa1   :  { %p385_p12 = scmp.lt.s32.totalorder %s383_s24, %s379_s23 }
  0xa3   :  { %p386_p13 = por %p385_p12, %p384_p11 }
  0xa5   :  { %p387_p0 = pnand %p386_p13, %p380_p10 }
  0xa7   :  { %390 = shalt.err (!%p387_p0)
}
  0xa8   :  { %323 = dma.vmem_to_hbm [thread:$0]  %s321_s18, 16, %s437_s2, [#allocation7]  }
  0xa9   :  { %401 = dma.done.wait [#allocation4], 16  }
  0xaa   :  { %402 = vsyncadd [#allocation4], 4294967280 }
  0xab   :  { %403 = dma.done.wait [#allocation7], 16  }
  0xac   :  { %404 = vsyncadd [#allocation7], 4294967280 }
  0xad   :  { %330 = vsyncpa [#allocation3], 1 }
  0xae   :  { %331 = vsyncpa [#allocation4], 1 }
  0xaf   :  { %332 = vsyncpa [#allocation7], 1 }

</bundles_post_ra>
